<compile_context>
chip_gen: v7x
topology: tpu7x:2x2x1
jax: 0.10.0
libtpu: 0.0.40
codegen_flags: <defaults>
</compile_context>

<pallas_src>
import jax
import jax.numpy as jnp
from jax.experimental import pallas as pl
from jax.experimental.pallas import tpu as pltpu


def _round_up(x, m):
    return (x + m - 1) // m * m


def _head_kernel(x_ref, w_ref, b_ref, o_ref):
    x = x_ref[...]
    w = w_ref[...]
    if x.dtype != w.dtype:
        # In-kernel cast: bf16 MXU operands without an extra HBM pass over x.
        x = x.astype(w.dtype)
    logits = jnp.dot(x, w, preferred_element_type=jnp.float32)
    logits = logits + b_ref[...]              # (1, C_pad) f32, broadcasts
    # Numerically stable per-row softmax over the (padded) class axis, all f32.
    m = jnp.max(logits, axis=1, keepdims=True)
    e = jnp.exp(logits - m)                   # padded cols: exp(-1e30 - m) == 0
    denom = jnp.sum(e, axis=1, keepdims=True)
    probs = e * pl.reciprocal(denom, approx=True)   # EUP vrcp (VALU-free)
    o_ref[...] = probs.astype(o_ref.dtype)


def prepare_head_params(w, b, *, matmul_dtype=None):
    """One-time parameter prep. Cache the result; do NOT redo this per call.

    w: (C, D) weight in PyTorch nn.Linear layout.   b: (C,) bias.
    matmul_dtype: optional MXU operand dtype (e.g. jnp.bfloat16). The x tile is
        cast to this dtype inside the kernel; accumulation/softmax stay f32.
    Returns (w_t, b_pad): (D, C_pad) padded W^T and (1, C_pad) f32 padded bias.
    """
    C, D = w.shape
    assert b.shape == (C,)
    w_dtype = matmul_dtype if matmul_dtype is not None else w.dtype
    # Class-axis padding: lane-dense 128 for large D (unmasked vst), narrow
    # sublane-sized padding for small-D heads (16x fewer output bytes).
    C_pad = _round_up(C, 128) if D > 512 else _round_up(C, 8)
    w_t = jnp.zeros((D, C_pad), dtype=w_dtype).at[:, :C].set(w.T.astype(w_dtype))
    # -1e30 padding is only safe while bias/logits stay f32 (kept invariant).
    b_pad = (jnp.full((1, C_pad), -1e30, dtype=jnp.float32)
             .at[0, :C].set(b.astype(jnp.float32)))
    return w_t, b_pad


def classification_head_apply(x, w_t, b_pad, *, num_classes=None, block_m=512,
                              interpret=False):
    """Run the head on prepared params. x: (B, D). Returns (B, num_classes)."""
    B, D = x.shape
    Dw, C_pad = w_t.shape
    assert D == Dw and b_pad.shape == (1, C_pad)
    out_dtype = x.dtype

    # ---- batch tiling (D- and generation-aware) -----------------------------
    x_item = jnp.dtype(x.dtype).itemsize
    w_item = jnp.dtype(w_t.dtype).itemsize
    out_item = jnp.dtype(out_dtype).itemsize
    # bf16 x in HBM packs 2 rows per sublane -> 16-row alignment; f32 -> 8.
    align = 16 if x_item < 4 else 8

    tm = _round_up(min(block_m, max(B, align)), align)
    # VMEM budget: double-buffered x tile + double-buffered out tile
    # + single-buffered weight/bias.  24 MiB keeps us under v6e/v7x's 32 MiB
    # scoped default and well inside v7x's 64 MiB physical VMEM.
    fixed_bytes = D * C_pad * w_item + C_pad * 4
    per_row_bytes = 2 * D * x_item + 2 * C_pad * out_item
    budget = 24 << 20
    while tm > align and fixed_bytes + tm * per_row_bytes > budget:
        tm = max(align, _round_up(tm // 2, align))
    # Ensure >= 2 grid steps when B allows: shards the "parallel" batch axis
    # across v7x's two TensorCores and lets the pipeline overlap DMA/compute.
    if B > align:
        tm = min(tm, _round_up(pl.cdiv(B, 2), align))

    grid = (pl.cdiv(B, tm),)   # partial last tile -> masked store, no x pad copy

    needed = fixed_bytes + tm * per_row_bytes + (1 << 20)
    vmem_limit = int(min(48 << 20, max(2 * needed, 16 << 20)))

    cost = pl.CostEstimate(
        flops=2 * B * D * C_pad + 6 * B * C_pad,
        transcendentals=B * C_pad,
        bytes_accessed=(B * D * x_item + D * C_pad * w_item
                        + C_pad * 4 + B * C_pad * out_item),
    )

    def build(single_buffer_params):
        resident = (dict(pipeline_mode=pl.Buffered(1))
                    if single_buffer_params else {})
        return pl.pallas_call(
            _head_kernel,
            out_shape=jax.ShapeDtypeStruct((B, C_pad), out_dtype),
            grid_spec=pltpu.PrefetchScalarGridSpec(
                num_scalar_prefetch=0,
                grid=grid,
                in_specs=[
                    pl.BlockSpec((tm, D), lambda i: (i, 0)),   # streamed x tile
                    pl.BlockSpec((D, C_pad), lambda i: (0, 0), **resident),
                    pl.BlockSpec((1, C_pad), lambda i: (0, 0), **resident),
                ],
                out_specs=pl.BlockSpec((tm, C_pad), lambda i: (i, 0)),
            ),
            compiler_params=pltpu.CompilerParams(
                dimension_semantics=("parallel",),
                vmem_limit_bytes=vmem_limit,
            ),
            cost_estimate=cost,
            interpret=interpret,
        )

    try:
        probs_pad = build(True)(x, w_t, b_pad)
    except Exception:
        # Fallback if this Pallas build rejects single-buffered grid-invariant
        # blocks; the only cost is one extra VMEM copy of the small weight.
        probs_pad = build(False)(x, w_t, b_pad)

    C = num_classes if num_classes is not None else C_pad
    return probs_pad[:, :C]


def classification_head(x, w, b, *, matmul_dtype=None, block_m=512,
                        interpret=False):
    """One-shot convenience wrapper. For repeated inference, call
    prepare_head_params() once and reuse (w_t, b_pad) with
    classification_head_apply()."""
    w_t, b_pad = prepare_head_params(w, b, matmul_dtype=matmul_dtype)
    return classification_head_apply(x, w_t, b_pad, num_classes=w.shape[0],
                                     block_m=block_m, interpret=interpret)


if __name__ == "__main__":
    key = jax.random.PRNGKey(0)
    B, in_dim, num_classes = 2, 32, 5

    kx, kw, kb = jax.random.split(key, 3)
    x = jax.random.normal(kx, (B, in_dim), dtype=jnp.float32)

    # Deterministic params mimicking nn.Linear's uniform(-1/sqrt(D), 1/sqrt(D)).
    bound = 1.0 / jnp.sqrt(jnp.float32(in_dim))
    w = jax.random.uniform(kw, (num_classes, in_dim), dtype=jnp.float32,
                           minval=-bound, maxval=bound)   # PyTorch layout (C, D)
    b = jax.random.uniform(kb, (num_classes,), dtype=jnp.float32,
                           minval=-bound, maxval=bound)

    ref = jax.nn.softmax(x @ w.T + b, axis=1)

    # Recommended usage: prepare params once, apply many times.
    w_t, b_pad = prepare_head_params(w, b)
    probs = jax.block_until_ready(
        classification_head_apply(x, w_t, b_pad, num_classes=num_classes))
    assert probs.shape == (B, num_classes)
    # Tolerance covers the EUP approximate reciprocal (~1e-4 rel. error).
    assert jnp.allclose(probs, ref, atol=2e-3), "f32 path mismatch vs reference"
    assert jnp.allclose(jnp.sum(probs, axis=1), 1.0, atol=2e-3)

    # bf16 MXU-operand path: weight prepared in bf16, x tile cast in-kernel
    # (no extra HBM pass); accumulation and softmax remain f32.
    probs_bf16 = jax.block_until_ready(
        classification_head(x, w, b, matmul_dtype=jnp.bfloat16))
    assert probs_bf16.shape == (B, num_classes)
    assert jnp.allclose(probs_bf16, ref, atol=2e-2), "bf16 path mismatch vs reference"

    print("KERNEL_OK")
</pallas_src>

<mosaic_0001>
module attributes {stable_mosaic.version = 11 : i64} {
  func.func @_head_kernel(%arg0: i32, %arg1: memref<8x32xf32, #tpu.memory_space<vmem>>, %arg2: memref<32x8xf32, #tpu.memory_space<vmem>>, %arg3: memref<1x8xf32, #tpu.memory_space<vmem>>, %arg4: memref<8x8xf32, #tpu.memory_space<vmem>>) attributes {dimension_semantics = [#tpu.dimension_semantics<parallel>], iteration_bounds = array<i64: 1>, scalar_prefetch = 0 : i64, scratch_operands = 0 : i64, tpu.core_type = #tpu.core_type<tc>, window_params = [{transform_indices = @transform_0, window_bounds = array<i64: 8, 32>}, {pipeline_mode = #tpu.pipeline_mode<synchronous>, transform_indices = @transform_1, window_bounds = array<i64: 32, 8>}, {pipeline_mode = #tpu.pipeline_mode<synchronous>, transform_indices = @transform_2, window_bounds = array<i64: 1, 8>}, {transform_indices = @transform_3, window_bounds = array<i64: 8, 8>}]} {
    %c0 = arith.constant 0 : index
    %c0_0 = arith.constant 0 : index
    %0 = vector.load %arg1[%c0, %c0_0] : memref<8x32xf32, #tpu.memory_space<vmem>>, vector<8x32xf32>
    %c0_1 = arith.constant 0 : index
    %c0_2 = arith.constant 0 : index
    %1 = vector.load %arg2[%c0_1, %c0_2] : memref<32x8xf32, #tpu.memory_space<vmem>>, vector<32x8xf32>
    %cst = arith.constant dense<0.000000e+00> : vector<8x8xf32>
    %2 = tpu.matmul %0, %1, %cst {dimension_numbers = #tpu.dot_dimension_numbers<[1], [0], [0], [1], [0, 0, 1, 1], [], []>} : vector<8x32xf32>, vector<32x8xf32>, vector<8x8xf32> -> vector<8x8xf32>
    %c0_3 = arith.constant 0 : index
    %c0_4 = arith.constant 0 : index
    %3 = vector.load %arg3[%c0_3, %c0_4] : memref<1x8xf32, #tpu.memory_space<vmem>>, vector<1x8xf32>
    %4 = vector.broadcast %3 : vector<1x8xf32> to vector<8x8xf32>
    %5 = arith.addf %2, %4 : vector<8x8xf32>
    %cst_5 = arith.constant dense<0xFF800000> : vector<8xf32>
    %6 = vector.multi_reduction <maximumf>, %5, %cst_5 [1] : vector<8x8xf32> to vector<8xf32>
    %7 = vector.shape_cast %6 : vector<8xf32> to vector<8x1xf32>
    %8 = vector.broadcast %7 : vector<8x1xf32> to vector<8x8xf32>
    %9 = arith.subf %5, %8 : vector<8x8xf32>
    %10 = math.exp %9 : vector<8x8xf32>
    %cst_6 = arith.constant dense<0.000000e+00> : vector<8xf32>
    %11 = vector.multi_reduction <add>, %10, %cst_6 [1] : vector<8x8xf32> to vector<8xf32>
    %12 = vector.shape_cast %11 : vector<8xf32> to vector<8x1xf32>
    %13 = tpu.reciprocal %12 {approx = true} : vector<8x1xf32> -> vector<8x1xf32>
    %14 = vector.broadcast %13 : vector<8x1xf32> to vector<8x8xf32>
    %15 = arith.mulf %10, %14 : vector<8x8xf32>
    %c0_7 = arith.constant 0 : index
    %c0_8 = arith.constant 0 : index
    %16 = vector.load %arg4[%c0_7, %c0_8] : memref<8x8xf32, #tpu.memory_space<vmem>>, vector<8x8xf32>
    tpu.vector_store %arg4[%c0_7, %c0_8], %15 {strides = array<i32>} : memref<8x8xf32, #tpu.memory_space<vmem>>, vector<8x8xf32>,
    return
  }
  func.func @transform_0(%arg0: i32) -> (i32, i32) {
    %c0_i32 = arith.constant 0 : i32
    %c0_i32_0 = arith.constant 0 : i32
    return %arg0, %c0_i32 : i32, i32
  }
  func.func @transform_1(%arg0: i32) -> (i32, i32) {
    %c0_i32 = arith.constant 0 : i32
    %c0_i32_0 = arith.constant 0 : i32
    %c0_i32_1 = arith.constant 0 : i32
    return %c0_i32, %c0_i32_0 : i32, i32
  }
  func.func @transform_2(%arg0: i32) -> (i32, i32) {
    %c0_i32 = arith.constant 0 : i32
    %c0_i32_0 = arith.constant 0 : i32
    %c0_i32_1 = arith.constant 0 : i32
    return %c0_i32, %c0_i32_0 : i32, i32
  }
  func.func @transform_3(%arg0: i32) -> (i32, i32) {
    %c0_i32 = arith.constant 0 : i32
    %c0_i32_0 = arith.constant 0 : i32
    return %arg0, %c0_i32 : i32, i32
  }
}

module attributes {stable_mosaic.version = 11 : i64} {
  func.func @_head_kernel(%arg0: i32, %arg1: memref<8x32xf32, #tpu.memory_space<vmem>>, %arg2: memref<32x8xf32, #tpu.memory_space<vmem>>, %arg3: memref<1x8xf32, #tpu.memory_space<vmem>>, %arg4: memref<8x8xf32, #tpu.memory_space<vmem>>) attributes {dimension_semantics = [#tpu.dimension_semantics<parallel>], iteration_bounds = array<i64: 1>, scalar_prefetch = 0 : i64, scratch_operands = 0 : i64, tpu.core_type = #tpu.core_type<tc>, window_params = [{transform_indices = @transform_0, window_bounds = array<i64: 8, 32>}, {pipeline_mode = #tpu.pipeline_mode<synchronous>, transform_indices = @transform_1, window_bounds = array<i64: 32, 8>}, {pipeline_mode = #tpu.pipeline_mode<synchronous>, transform_indices = @transform_2, window_bounds = array<i64: 1, 8>}, {transform_indices = @transform_3, window_bounds = array<i64: 8, 8>}]} {
    %c0 = arith.constant 0 : index
    %c0_0 = arith.constant 0 : index
    %0 = vector.load %arg1[%c0, %c0_0] : memref<8x32xf32, #tpu.memory_space<vmem>>, vector<8x32xf32>
    %c0_1 = arith.constant 0 : index
    %c0_2 = arith.constant 0 : index
    %1 = vector.load %arg2[%c0_1, %c0_2] : memref<32x8xf32, #tpu.memory_space<vmem>>, vector<32x8xf32>
    %cst = arith.constant dense<0.000000e+00> : vector<8x8xf32>
    %2 = tpu.matmul %0, %1, %cst {dimension_numbers = #tpu.dot_dimension_numbers<[1], [0], [0], [1], [0, 0, 1, 1], [], []>} : vector<8x32xf32>, vector<32x8xf32>, vector<8x8xf32> -> vector<8x8xf32>
    %c0_3 = arith.constant 0 : index
    %c0_4 = arith.constant 0 : index
    %3 = vector.load %arg3[%c0_3, %c0_4] : memref<1x8xf32, #tpu.memory_space<vmem>>, vector<1x8xf32>
    %4 = vector.broadcast %3 : vector<1x8xf32> to vector<8x8xf32>
    %5 = arith.addf %2, %4 : vector<8x8xf32>
    %cst_5 = arith.constant dense<0xFF800000> : vector<8xf32>
    %6 = vector.multi_reduction <maximumf>, %5, %cst_5 [1] : vector<8x8xf32> to vector<8xf32>
    %7 = vector.shape_cast %6 : vector<8xf32> to vector<8x1xf32>
    %8 = vector.broadcast %7 : vector<8x1xf32> to vector<8x8xf32>
    %9 = arith.subf %5, %8 : vector<8x8xf32>
    %10 = math.exp %9 : vector<8x8xf32>
    %cst_6 = arith.constant dense<0.000000e+00> : vector<8xf32>
    %11 = vector.multi_reduction <add>, %10, %cst_6 [1] : vector<8x8xf32> to vector<8xf32>
    %12 = vector.shape_cast %11 : vector<8xf32> to vector<8x1xf32>
    %13 = tpu.reciprocal %12 {approx = true} : vector<8x1xf32> -> vector<8x1xf32>
    %14 = vector.broadcast %13 : vector<8x1xf32> to vector<8x8xf32>
    %15 = arith.mulf %10, %14 : vector<8x8xf32>
    %c0_7 = arith.constant 0 : index
    %c0_8 = arith.constant 0 : index
    %16 = vector.load %arg4[%c0_7, %c0_8] : memref<8x8xf32, #tpu.memory_space<vmem>>, vector<8x8xf32>
    tpu.vector_store %arg4[%c0_7, %c0_8], %15 {strides = array<i32>} : memref<8x8xf32, #tpu.memory_space<vmem>>, vector<8x8xf32>,
    return
  }
  func.func @transform_0(%arg0: i32) -> (i32, i32) {
    %c0_i32 = arith.constant 0 : i32
    %c0_i32_0 = arith.constant 0 : i32
    return %arg0, %c0_i32 : i32, i32
  }
  func.func @transform_1(%arg0: i32) -> (i32, i32) {
    %c0_i32 = arith.constant 0 : i32
    %c0_i32_0 = arith.constant 0 : i32
    %c0_i32_1 = arith.constant 0 : i32
    return %c0_i32, %c0_i32_0 : i32, i32
  }
  func.func @transform_2(%arg0: i32) -> (i32, i32) {
    %c0_i32 = arith.constant 0 : i32
    %c0_i32_0 = arith.constant 0 : i32
    %c0_i32_1 = arith.constant 0 : i32
    return %c0_i32, %c0_i32_0 : i32, i32
  }
  func.func @transform_3(%arg0: i32) -> (i32, i32) {
    %c0_i32 = arith.constant 0 : i32
    %c0_i32_0 = arith.constant 0 : i32
    return %arg0, %c0_i32 : i32, i32
  }
}

</mosaic_0001>

<bundles_post_ra>
// kernel: tpu_custom_call.1
= control target key start
LH: loop header
LB: loop body
LE: loop exit
PB: predicated region body
PF: predicated region fallthrough
CT: control target
= control target key end

     0   :  { %8 = vsyncpa [#allocation3], 0  ;;  %v188_v2 = vmov 0.0|0.0   ;;  %vm189_vm0 = vmmov 0   ;;  %v190_v6 = vmov 0.0   ;;  %vm27_vm1 = vcmask 261120   ;;  %s247_s0 = inlined_call_operand.vmem [shape: f32[2,32], index: 0, kind: input, shape index: {}]   ;;  %s248_s1 = inlined_call_operand.vmem [shape: f32[32,8], index: 1, kind: input, shape index: {}]   ;;  %s249_s2 = inlined_call_operand.vmem [shape: f32[1,8], index: 2, kind: input, shape index: {}]   ;;  %s250_s3 = inlined_call_operand.hbm [shape: f32[2,8], index: 3, kind: output, shape index: {}]  }
   0x1   :  { %v16_v0 = vld [vmem:[%s248_s1] sm:$0xff]  ;;  %v17_v1 = vld [vmem:[%s248_s1 + $0x8] sm:$0xff]  ;;  %148 = vmatprep.subr.bf16.mxu0 %v188_v2  ;;  %v18_v4 = vld [vmem:[%s248_s1 + $0x10] sm:$0xff]  ;;  %145 = vmatprep.mubr.msk.f32.mxu0 %vm189_vm0, %v190_v6  ;;  %vm101_vm2 = vcmask 64512  }
   0x2   :  { %v149_v3 = vpack.c.bf16 %v17_v1, %v16_v0  ;;  %v19_v5 = vld [vmem:[%s248_s1 + $0x18] sm:$0xff]  ;;  %v15_v8 = vld [vmem:[%s247_s0] sm:$0xff] }
   0x3   :  { %v152_v7 = vpack.c.bf16 %v19_v5, %v18_v4  ;;  %v130_v9 = vld [vmem:[%s249_s2] ss:$0 sm:$0xff] }
   0x4   :  { %150 = vmatpush3.bf16.msra.mxu0 %v149_v3 }
   0x5   :  { %151 = vmatprep.subr.bf16.mxu0 %v188_v2 }
   0x8   :  { %153 = vmatpush3.bf16.msra.mxu0 %v152_v7 }
   0xb   :  { %146 = vmatmul.mubr.msk.f32.vlgmr.msra.gmra.mrb[0].mxu0 %vm27_vm1, %v15_v8 }
  0xde   :  { %v97_v10 = vpop.f32.mrb[0].mxu0 }
  0xdf   :  { %v98_v11 = vadd.f32 %v130_v9, %v97_v10  ;;  %v147_v12 = vpop.f32.mrb[1].mxu0 }
  0xe1   :  { %v102_v13 = vsel %vm101_vm2, %v98_v11, -inf }
  0xe2   :  { %103 = vmax.xlane.f32.xlu0 %v102_v13 }
 0x16f   :  { %v104_v14 = vpop.xlane.xlu0 %103 }
 0x170   :  { %v105_v15 = vsub.f32 %v98_v11, %v104_v14 }
 0x172   :  { %v106_v16 = vmul.f32 1.442695, %v105_v15 }
 0x174   :  { %160 = vpow2.f32 %v106_v16 }
 0x17e   :  { %v161_v17 = vpop.eup %160 }
 0x17f   :  { %v108_v18 = vsel %vm101_vm2, %v161_v17, 0.0 }
 0x180   :  { %109 = vadd.xlane.f32.xlu0 %v108_v18 }
 0x20d   :  { %v110_v19 = vpop.xlane.xlu0 %109 }
 0x20e   :  { %162 = vrcp.f32 %v110_v19 }
 0x218   :  { %v163_v20 = vpop.eup %162 }
 0x219   :  { %v112_v21 = vmul.f32 %v163_v20, %v161_v17 }
 0x21b   :  { %113 = vst.msk [vmem:[#allocation2] sm:$0xff] %vm101_vm2, %v112_v21 }
 0x21c   :  { %118 = vsyncadd [#allocation3], 96  ;;  %s191_s0 = smov [#allocation2]  }
 0x21d   :  { %s119_s1 = sshll.u32 %s191_s0, 4  ;;  %s120_s1 = int_to_ptr.vmem [resolvable:$true] %s119_s1 }
 0x21e   :  { %s164_s2 = scalar_lea.vmem %s120_s1, 32  ;;  %s168_s24 = scalar_lea.vmem %s120_s1, 128 }
 0x21f   :  { %p165_p0 = scmp.ne.s32.totalorder %s120_s1, %s164_s2  ;;  %p169_p1 = scmp.lt.s32.totalorder %s120_s1, %s120_s1 }
 0x220   :  { %p170_p2 = scmp.lt.s32.totalorder %s168_s24, %s164_s2 }
 0x222   :  { %p171_p3 = por %p170_p2, %p169_p1 }
 0x224   :  { %p172_p4 = pnand %p171_p3, %p165_p0 }
 0x226   :  { %175 = shalt.err (!%p172_p4)
}
 0x227   :  { %s176_s27 = scalar_lea.hbm %s250_s3, 32 }
 0x228   :  { %p177_p5 = scmp.ne.s32.totalorder %s250_s3, %s176_s27  ;;  %p180_p6 = scmp.lt.u32.totalorder %s176_s27, %s250_s3 }
 0x22a   :  { %p182_p7 = pnand %p180_p6, %p177_p5 }
 0x22c   :  { %185 = shalt.err (!%p182_p7)
}
 0x22d   :  { %s192_s5 = smov 32   ;;  %s193_s6 = smov 2  }
 0x22e   :  { %125 = dma.vmem_to_hbm [thread:$0]  %s120_s1, 32, %s250_s3, [#allocation3], %s192_s5, %s192_s5, %s193_s6  }
 0x22f   :  { %186 = dma.done.wait [#allocation3], 128  }
 0x230   :  { %187 = vsyncadd [#allocation3], 4294967168 }
 0x231   :  { %129 = vsyncpa [#allocation3], 1 }

// kernel: tpu_custom_call.1
= control target key start
LH: loop header
LB: loop body
LE: loop exit
PB: predicated region body
PF: predicated region fallthrough
CT: control target
= control target key end

     0   :  { %8 = vsyncpa [#allocation3], 0  ;;  %v188_v2 = vmov 0.0|0.0   ;;  %vm189_vm0 = vmmov 0   ;;  %v190_v6 = vmov 0.0   ;;  %vm27_vm1 = vcmask 261120   ;;  %s247_s0 = inlined_call_operand.vmem [shape: f32[2,32], index: 0, kind: input, shape index: {}]   ;;  %s248_s1 = inlined_call_operand.vmem [shape: f32[32,8], index: 1, kind: input, shape index: {}]   ;;  %s249_s2 = inlined_call_operand.vmem [shape: f32[1,8], index: 2, kind: input, shape index: {}]   ;;  %s250_s3 = inlined_call_operand.hbm [shape: f32[2,8], index: 3, kind: output, shape index: {}]  }
   0x1   :  { %v16_v0 = vld [vmem:[%s248_s1] sm:$0xff]  ;;  %v17_v1 = vld [vmem:[%s248_s1 + $0x8] sm:$0xff]  ;;  %148 = vmatprep.subr.bf16.mxu0 %v188_v2  ;;  %v18_v4 = vld [vmem:[%s248_s1 + $0x10] sm:$0xff]  ;;  %145 = vmatprep.mubr.msk.f32.mxu0 %vm189_vm0, %v190_v6  ;;  %vm101_vm2 = vcmask 64512  }
   0x2   :  { %v149_v3 = vpack.c.bf16 %v17_v1, %v16_v0  ;;  %v19_v5 = vld [vmem:[%s248_s1 + $0x18] sm:$0xff]  ;;  %v15_v8 = vld [vmem:[%s247_s0] sm:$0xff] }
   0x3   :  { %v152_v7 = vpack.c.bf16 %v19_v5, %v18_v4  ;;  %v130_v9 = vld [vmem:[%s249_s2] ss:$0 sm:$0xff] }
   0x4   :  { %150 = vmatpush3.bf16.msra.mxu0 %v149_v3 }
   0x5   :  { %151 = vmatprep.subr.bf16.mxu0 %v188_v2 }
   0x8   :  { %153 = vmatpush3.bf16.msra.mxu0 %v152_v7 }
   0xb   :  { %146 = vmatmul.mubr.msk.f32.vlgmr.msra.gmra.mrb[0].mxu0 %vm27_vm1, %v15_v8 }
  0xde   :  { %v97_v10 = vpop.f32.mrb[0].mxu0 }
  0xdf   :  { %v98_v11 = vadd.f32 %v130_v9, %v97_v10  ;;  %v147_v12 = vpop.f32.mrb[1].mxu0 }
  0xe1   :  { %v102_v13 = vsel %vm101_vm2, %v98_v11, -inf }
  0xe2   :  { %103 = vmax.xlane.f32.xlu0 %v102_v13 }
 0x16f   :  { %v104_v14 = vpop.xlane.xlu0 %103 }
 0x170   :  { %v105_v15 = vsub.f32 %v98_v11, %v104_v14 }
 0x172   :  { %v106_v16 = vmul.f32 1.442695, %v105_v15 }
 0x174   :  { %160 = vpow2.f32 %v106_v16 }
 0x17e   :  { %v161_v17 = vpop.eup %160 }
 0x17f   :  { %v108_v18 = vsel %vm101_vm2, %v161_v17, 0.0 }
 0x180   :  { %109 = vadd.xlane.f32.xlu0 %v108_v18 }
 0x20d   :  { %v110_v19 = vpop.xlane.xlu0 %109 }
 0x20e   :  { %162 = vrcp.f32 %v110_v19 }
 0x218   :  { %v163_v20 = vpop.eup %162 }
 0x219   :  { %v112_v21 = vmul.f32 %v163_v20, %v161_v17 }
 0x21b   :  { %113 = vst.msk [vmem:[#allocation2] sm:$0xff] %vm101_vm2, %v112_v21 }
 0x21c   :  { %118 = vsyncadd [#allocation3], 96  ;;  %s191_s0 = smov [#allocation2]  }
 0x21d   :  { %s119_s1 = sshll.u32 %s191_s0, 4  ;;  %s120_s1 = int_to_ptr.vmem [resolvable:$true] %s119_s1 }
 0x21e   :  { %s164_s2 = scalar_lea.vmem %s120_s1, 32  ;;  %s168_s24 = scalar_lea.vmem %s120_s1, 128 }
 0x21f   :  { %p165_p0 = scmp.ne.s32.totalorder %s120_s1, %s164_s2  ;;  %p169_p1 = scmp.lt.s32.totalorder %s120_s1, %s120_s1 }
 0x220   :  { %p170_p2 = scmp.lt.s32.totalorder %s168_s24, %s164_s2 }
 0x222   :  { %p171_p3 = por %p170_p2, %p169_p1 }
 0x224   :  { %p172_p4 = pnand %p171_p3, %p165_p0 }
 0x226   :  { %175 = shalt.err (!%p172_p4)
}
 0x227   :  { %s176_s27 = scalar_lea.hbm %s250_s3, 32 }
 0x228   :  { %p177_p5 = scmp.ne.s32.totalorder %s250_s3, %s176_s27  ;;  %p180_p6 = scmp.lt.u32.totalorder %s176_s27, %s250_s3 }
 0x22a   :  { %p182_p7 = pnand %p180_p6, %p177_p5 }
 0x22c   :  { %185 = shalt.err (!%p182_p7)
}
 0x22d   :  { %s192_s5 = smov 32   ;;  %s193_s6 = smov 2  }
 0x22e   :  { %125 = dma.vmem_to_hbm [thread:$0]  %s120_s1, 32, %s250_s3, [#allocation3], %s192_s5, %s192_s5, %s193_s6  }
 0x22f   :  { %186 = dma.done.wait [#allocation3], 128  }
 0x230   :  { %187 = vsyncadd [#allocation3], 4294967168 }
 0x231   :  { %129 = vsyncpa [#allocation3], 1 }

</bundles_post_ra>
